<compile_context>
chip_gen: v7x
topology: tpu7x:2x2x1
jax: 0.10.0
libtpu: 0.0.40
codegen_flags: <defaults>
</compile_context>

<pallas_src>
import functools

import jax
import jax.numpy as jnp
from jax.experimental import pallas as pl
from jax.experimental.pallas import tpu as pltpu


def _round_up(x: int, m: int) -> int:
    return ((x + m - 1) // m) * m


# ----------------------------------------------------------------------------
# Kernel
# ----------------------------------------------------------------------------
def actor_kernel(s_ref, w1_ref, b1_ref, w2_ref, b2_ref, w3_ref, b3_ref, o_ref):
    # State and weights arrive already in bf16; MXU accumulates in f32,
    # bias add / ReLU / tanh run in f32, final store in o_ref.dtype.
    x = s_ref[...]

    h1 = jnp.dot(x, w1_ref[...], preferred_element_type=jnp.float32) + b1_ref[...]
    h1 = jnp.maximum(h1, 0.0)

    h2 = jnp.dot(h1.astype(jnp.bfloat16), w2_ref[...],
                 preferred_element_type=jnp.float32) + b2_ref[...]
    h2 = jnp.maximum(h2, 0.0)

    h3 = jnp.dot(h2.astype(jnp.bfloat16), w3_ref[...],
                 preferred_element_type=jnp.float32) + b3_ref[...]
    o_ref[...] = jnp.tanh(h3).astype(o_ref.dtype)


# ----------------------------------------------------------------------------
# Parameter preparation
# ----------------------------------------------------------------------------
def _pad_to(x, shape):
    pads = [(0, t - s) for s, t in zip(x.shape, shape)]
    return jnp.pad(x, pads)


def prepare_params(params_f32):
    """Zero-pad feature dims to multiples of 128; weights -> bf16, biases -> f32.

    Padded hidden units stay exactly 0 through bias-add/ReLU and padded action
    columns are tanh(0)=0 and sliced off, so results are unchanged.
    """
    w1, b1, w2, b2, w3, b3 = params_f32
    s_dim, h1 = w1.shape
    _, h2 = w2.shape
    _, a_dim = w3.shape
    h1p, h2p, ap = _round_up(h1, 128), _round_up(h2, 128), _round_up(a_dim, 128)

    w1p = _pad_to(w1, (s_dim, h1p)).astype(jnp.bfloat16)
    w2p = _pad_to(w2, (h1p, h2p)).astype(jnp.bfloat16)
    w3p = _pad_to(w3, (h2p, ap)).astype(jnp.bfloat16)
    b1p = _pad_to(b1, (1, h1p)).astype(jnp.float32)
    b2p = _pad_to(b2, (1, h2p)).astype(jnp.float32)
    b3p = _pad_to(b3, (1, ap)).astype(jnp.float32)
    return (w1p, b1p, w2p, b2p, w3p, b3p)


# ----------------------------------------------------------------------------
# Batch-tile selection (static, happens at trace time)
# ----------------------------------------------------------------------------
def _choose_batch_tile(B: int, max_tile: int) -> tuple[int, int]:
    """Return (tb, b_pad).

    Preference order:
      1) tile divides B exactly AND grid has >= 2 steps (no pad copy, both v7x
         TensorCores busy),
      2) tile divides B exactly (single step, no pad copy),
      3) B large: pad up to the biggest tile with >= 2 steps (<= 1 ragged tile),
      4) tiny batch: single padded tile (sublane-aligned).
    """
    cands = [t for t in (1024, 512, 256, 128, 64, 32, 16, 8) if t <= max_tile]
    for t in cands:
        if B % t == 0 and B // t >= 2:
            return t, B
    for t in cands:
        if B % t == 0:
            return t, B
    for t in cands:
        if B >= 2 * t:
            return t, _round_up(B, t)
    t = max(8, _round_up(B, 8))
    return t, t


# ----------------------------------------------------------------------------
# Forward pass
# ----------------------------------------------------------------------------
@functools.partial(jax.jit,
                   static_argnames=("action_dim", "out_dtype", "max_batch_tile"))
def actor_forward(state, prepared_params, action_dim,
                  out_dtype=jnp.bfloat16, max_batch_tile=512):
    """state: [B, state_dim] f32 (or bf16).  prepared_params: prepare_params(...)."""
    w1, b1, w2, b2, w3, b3 = prepared_params
    B, s_dim = state.shape
    h1p = w1.shape[1]
    h2p = w2.shape[1]
    ap = w3.shape[1]

    # Pre-cast state to bf16 in the wrapper: halves state DMA, removes the
    # in-kernel cast.  (Genuinely reduces HBM bytes, not just op motion.)
    state = state.astype(jnp.bfloat16)

    tb, b_pad = _choose_batch_tile(B, max_batch_tile)
    if b_pad != B:
        state = _pad_to(state, (b_pad, s_dim))

    grid = (b_pad // tb,)
    const2d = lambda i: (0, 0)  # weights / biases resident across batch tiles

    out_padded = pl.pallas_call(
        actor_kernel,
        out_shape=jax.ShapeDtypeStruct((b_pad, ap), out_dtype),
        grid=grid,
        in_specs=[
            pl.BlockSpec((tb, s_dim), lambda i: (i, 0)),
            pl.BlockSpec((s_dim, h1p), const2d),
            pl.BlockSpec((1, h1p), const2d),
            pl.BlockSpec((h1p, h2p), const2d),
            pl.BlockSpec((1, h2p), const2d),
            pl.BlockSpec((h2p, ap), const2d),
            pl.BlockSpec((1, ap), const2d),
        ],
        out_specs=pl.BlockSpec((tb, ap), lambda i: (i, 0)),
        compiler_params=pltpu.CompilerParams(
            dimension_semantics=("parallel",),
        ),
    )(state, w1, b1, w2, b2, w3, b3)

    return out_padded[:B, :action_dim]


# ----------------------------------------------------------------------------
# Init + references
# ----------------------------------------------------------------------------
def init_actor_params(key, state_dim, action_dim, hidden1=400, hidden2=300):
    """f32 params matching the PyTorch module's _initialize_weights (pre-transposed)."""
    k1, k2, k3, kb1, kb2, kb3 = jax.random.split(key, 6)

    # fc1 / fc2: kaiming_normal_ (fan_in, gain=sqrt(2)) -> std = sqrt(2/fan_in)
    w1 = jax.random.normal(k1, (state_dim, hidden1), jnp.float32) * jnp.sqrt(2.0 / state_dim)
    w2 = jax.random.normal(k2, (hidden1, hidden2), jnp.float32) * jnp.sqrt(2.0 / hidden1)
    # fc3: xavier_uniform_ -> bound = sqrt(6/(fan_in+fan_out))
    bound3 = jnp.sqrt(6.0 / (hidden2 + action_dim))
    w3 = jax.random.uniform(k3, (hidden2, action_dim), jnp.float32, -bound3, bound3)

    # fc1/fc2 biases: PyTorch Linear default uniform(-1/sqrt(fan_in), 1/sqrt(fan_in))
    b1 = jax.random.uniform(kb1, (1, hidden1), jnp.float32,
                            -1.0 / jnp.sqrt(state_dim), 1.0 / jnp.sqrt(state_dim))
    b2 = jax.random.uniform(kb2, (1, hidden2), jnp.float32,
                            -1.0 / jnp.sqrt(hidden1), 1.0 / jnp.sqrt(hidden1))
    # fc3 bias: uniform(-0.003, 0.003)
    b3 = jax.random.uniform(kb3, (1, action_dim), jnp.float32, -0.003, 0.003)

    return (w1, b1, w2, b2, w3, b3)


def actor_reference_f32(state, params_f32):
    """Pure-f32 JAX reference (matches the PyTorch module exactly)."""
    w1, b1, w2, b2, w3, b3 = params_f32
    x = jnp.maximum(state @ w1 + b1, 0.0)
    x = jnp.maximum(x @ w2 + b2, 0.0)
    return jnp.tanh(x @ w3 + b3)


def actor_reference_matched(state, prepared_params, action_dim):
    """Reference with the same bf16-operand / f32-accumulate dtype path as the kernel."""
    w1, b1, w2, b2, w3, b3 = prepared_params
    x = state.astype(jnp.bfloat16)
    h1 = jnp.maximum(jnp.dot(x, w1, preferred_element_type=jnp.float32) + b1, 0.0)
    h2 = jnp.maximum(
        jnp.dot(h1.astype(jnp.bfloat16), w2, preferred_element_type=jnp.float32) + b2, 0.0)
    h3 = jnp.dot(h2.astype(jnp.bfloat16), w3, preferred_element_type=jnp.float32) + b3
    return jnp.tanh(h3)[:, :action_dim]


if __name__ == "__main__":
    key = jax.random.PRNGKey(0)
    k_param, k_state, k_state_big = jax.random.split(key, 3)

    batch = 8
    state_dim = 32
    action_dim = 8
    hidden1 = 400
    hidden2 = 300

    params_f32 = init_actor_params(k_param, state_dim, action_dim, hidden1, hidden2)
    prepared = prepare_params(params_f32)

    # ---- tiny-batch (serving) path: single grid step ----
    state = jax.random.normal(k_state, (batch, state_dim), jnp.float32)
    out = actor_forward(state, prepared, action_dim)
    out = jax.block_until_ready(out)
    assert out.shape == (batch, action_dim)
    out_f32 = out.astype(jnp.float32)

    # Tight check vs a dtype-matched JAX reference (also rounded to bf16 output).
    ref_matched = actor_reference_matched(state, prepared, action_dim)
    ref_matched_bf16 = ref_matched.astype(jnp.bfloat16).astype(jnp.float32)
    assert jnp.allclose(out_f32, ref_matched_bf16, atol=5e-3, rtol=5e-3), \
        "mismatch vs dtype-matched JAX reference"

    # Loose check vs the exact f32 PyTorch-equivalent reference
    # (bf16 weights + bf16 output introduce ~1e-2 level deviation).
    ref_f32 = actor_reference_f32(state, params_f32)
    assert jnp.allclose(out_f32, ref_f32, atol=5e-2, rtol=5e-2), \
        "mismatch vs f32 reference"

    # ---- larger batch: multi-tile grid (no pad copy, >= 2 steps) ----
    big_batch = 256
    state_big = jax.random.normal(k_state_big, (big_batch, state_dim), jnp.float32)
    out_big = actor_forward(state_big, prepared, action_dim)
    out_big = jax.block_until_ready(out_big)
    assert out_big.shape == (big_batch, action_dim)
    ref_big = actor_reference_matched(state_big, prepared, action_dim)
    ref_big_bf16 = ref_big.astype(jnp.bfloat16).astype(jnp.float32)
    assert jnp.allclose(out_big.astype(jnp.float32), ref_big_bf16,
                        atol=5e-3, rtol=5e-3), \
        "mismatch vs dtype-matched JAX reference (large batch)"

    print("KERNEL_OK")
</pallas_src>

<mosaic_0001>
module attributes {stable_mosaic.version = 11 : i64} {
  func.func @actor_kernel(%arg0: i32, %arg1: memref<8x32xbf16, #tpu.memory_space<vmem>>, %arg2: memref<32x512xbf16, #tpu.memory_space<vmem>>, %arg3: memref<1x512xf32, #tpu.memory_space<vmem>>, %arg4: memref<512x384xbf16, #tpu.memory_space<vmem>>, %arg5: memref<1x384xf32, #tpu.memory_space<vmem>>, %arg6: memref<384x128xbf16, #tpu.memory_space<vmem>>, %arg7: memref<1x128xf32, #tpu.memory_space<vmem>>, %arg8: memref<8x128xbf16, #tpu.memory_space<vmem>>) attributes {dimension_semantics = [#tpu.dimension_semantics<parallel>], iteration_bounds = array<i64: 1>, scalar_prefetch = 0 : i64, scratch_operands = 0 : i64, tpu.core_type = #tpu.core_type<tc>, window_params = [{transform_indices = @transform_0, window_bounds = array<i64: 8, 32>}, {pipeline_mode = #tpu.pipeline_mode<synchronous>, transform_indices = @transform_1, window_bounds = array<i64: 32, 512>}, {pipeline_mode = #tpu.pipeline_mode<synchronous>, transform_indices = @transform_2, window_bounds = array<i64: 1, 512>}, {pipeline_mode = #tpu.pipeline_mode<synchronous>, transform_indices = @transform_3, window_bounds = array<i64: 512, 384>}, {pipeline_mode = #tpu.pipeline_mode<synchronous>, transform_indices = @transform_4, window_bounds = array<i64: 1, 384>}, {pipeline_mode = #tpu.pipeline_mode<synchronous>, transform_indices = @transform_5, window_bounds = array<i64: 384, 128>}, {pipeline_mode = #tpu.pipeline_mode<synchronous>, transform_indices = @transform_6, window_bounds = array<i64: 1, 128>}, {transform_indices = @transform_7, window_bounds = array<i64: 8, 128>}]} {
    %c0 = arith.constant 0 : index
    %c0_0 = arith.constant 0 : index
    %0 = vector.load %arg1[%c0, %c0_0] : memref<8x32xbf16, #tpu.memory_space<vmem>>, vector<8x32xbf16>
    %c0_1 = arith.constant 0 : index
    %c0_2 = arith.constant 0 : index
    %1 = vector.load %arg2[%c0_1, %c0_2] : memref<32x512xbf16, #tpu.memory_space<vmem>>, vector<32x512xbf16>
    %cst = arith.constant dense<0.000000e+00> : vector<8x512xf32>
    %2 = tpu.matmul %0, %1, %cst {dimension_numbers = #tpu.dot_dimension_numbers<[1], [0], [0], [1], [0, 0, 1, 1], [], []>} : vector<8x32xbf16>, vector<32x512xbf16>, vector<8x512xf32> -> vector<8x512xf32>
    %c0_3 = arith.constant 0 : index
    %c0_4 = arith.constant 0 : index
    %3 = vector.load %arg3[%c0_3, %c0_4] : memref<1x512xf32, #tpu.memory_space<vmem>>, vector<1x512xf32>
    %4 = vector.broadcast %3 : vector<1x512xf32> to vector<8x512xf32>
    %5 = arith.addf %2, %4 : vector<8x512xf32>
    %cst_5 = arith.constant 0.000000e+00 : f32
    %6 = vector.broadcast %cst_5 : f32 to vector<8x512xf32>
    %7 = arith.maximumf %5, %6 : vector<8x512xf32>
    %8 = arith.truncf %7 : vector<8x512xf32> to vector<8x512xbf16>
    %c0_6 = arith.constant 0 : index
    %c0_7 = arith.constant 0 : index
    %9 = vector.load %arg4[%c0_6, %c0_7] : memref<512x384xbf16, #tpu.memory_space<vmem>>, vector<512x384xbf16>
    %cst_8 = arith.constant dense<0.000000e+00> : vector<8x384xf32>
    %10 = tpu.matmul %8, %9, %cst_8 {dimension_numbers = #tpu.dot_dimension_numbers<[1], [0], [0], [1], [0, 0, 1, 1], [], []>} : vector<8x512xbf16>, vector<512x384xbf16>, vector<8x384xf32> -> vector<8x384xf32>
    %c0_9 = arith.constant 0 : index
    %c0_10 = arith.constant 0 : index
    %11 = vector.load %arg5[%c0_9, %c0_10] : memref<1x384xf32, #tpu.memory_space<vmem>>, vector<1x384xf32>
    %12 = vector.broadcast %11 : vector<1x384xf32> to vector<8x384xf32>
    %13 = arith.addf %10, %12 : vector<8x384xf32>
    %cst_11 = arith.constant 0.000000e+00 : f32
    %14 = vector.broadcast %cst_11 : f32 to vector<8x384xf32>
    %15 = arith.maximumf %13, %14 : vector<8x384xf32>
    %16 = arith.truncf %15 : vector<8x384xf32> to vector<8x384xbf16>
    %c0_12 = arith.constant 0 : index
    %c0_13 = arith.constant 0 : index
    %17 = vector.load %arg6[%c0_12, %c0_13] : memref<384x128xbf16, #tpu.memory_space<vmem>>, vector<384x128xbf16>
    %cst_14 = arith.constant dense<0.000000e+00> : vector<8x128xf32>
    %18 = tpu.matmul %16, %17, %cst_14 {dimension_numbers = #tpu.dot_dimension_numbers<[1], [0], [0], [1], [0, 0, 1, 1], [], []>} : vector<8x384xbf16>, vector<384x128xbf16>, vector<8x128xf32> -> vector<8x128xf32>
    %c0_15 = arith.constant 0 : index
    %c0_16 = arith.constant 0 : index
    %19 = vector.load %arg7[%c0_15, %c0_16] : memref<1x128xf32, #tpu.memory_space<vmem>>, vector<1x128xf32>
    %20 = vector.broadcast %19 : vector<1x128xf32> to vector<8x128xf32>
    %21 = arith.addf %18, %20 : vector<8x128xf32>
    %22 = math.tanh %21 : vector<8x128xf32>
    %23 = arith.truncf %22 : vector<8x128xf32> to vector<8x128xbf16>
    %c0_17 = arith.constant 0 : index
    %c0_18 = arith.constant 0 : index
    %24 = vector.load %arg8[%c0_17, %c0_18] : memref<8x128xbf16, #tpu.memory_space<vmem>>, vector<8x128xbf16>
    tpu.vector_store %arg8[%c0_17, %c0_18], %23 {strides = array<i32>} : memref<8x128xbf16, #tpu.memory_space<vmem>>, vector<8x128xbf16>,
    return
  }
  func.func @transform_0(%arg0: i32) -> (i32, i32) {
    %c0_i32 = arith.constant 0 : i32
    %c0_i32_0 = arith.constant 0 : i32
    return %arg0, %c0_i32 : i32, i32
  }
  func.func @transform_1(%arg0: i32) -> (i32, i32) {
    %c0_i32 = arith.constant 0 : i32
    %c0_i32_0 = arith.constant 0 : i32
    %c0_i32_1 = arith.constant 0 : i32
    return %c0_i32, %c0_i32_0 : i32, i32
  }
  func.func @transform_2(%arg0: i32) -> (i32, i32) {
    %c0_i32 = arith.constant 0 : i32
    %c0_i32_0 = arith.constant 0 : i32
    %c0_i32_1 = arith.constant 0 : i32
    return %c0_i32, %c0_i32_0 : i32, i32
  }
  func.func @transform_3(%arg0: i32) -> (i32, i32) {
    %c0_i32 = arith.constant 0 : i32
    %c0_i32_0 = arith.constant 0 : i32
    %c0_i32_1 = arith.constant 0 : i32
    return %c0_i32, %c0_i32_0 : i32, i32
  }
  func.func @transform_4(%arg0: i32) -> (i32, i32) {
    %c0_i32 = arith.constant 0 : i32
    %c0_i32_0 = arith.constant 0 : i32
    %c0_i32_1 = arith.constant 0 : i32
    return %c0_i32, %c0_i32_0 : i32, i32
  }
  func.func @transform_5(%arg0: i32) -> (i32, i32) {
    %c0_i32 = arith.constant 0 : i32
    %c0_i32_0 = arith.constant 0 : i32
    %c0_i32_1 = arith.constant 0 : i32
    return %c0_i32, %c0_i32_0 : i32, i32
  }
  func.func @transform_6(%arg0: i32) -> (i32, i32) {
    %c0_i32 = arith.constant 0 : i32
    %c0_i32_0 = arith.constant 0 : i32
    %c0_i32_1 = arith.constant 0 : i32
    return %c0_i32, %c0_i32_0 : i32, i32
  }
  func.func @transform_7(%arg0: i32) -> (i32, i32) {
    %c0_i32 = arith.constant 0 : i32
    %c0_i32_0 = arith.constant 0 : i32
    return %arg0, %c0_i32 : i32, i32
  }
}

</mosaic_0001>

<bundles_post_ra>
// kernel: actor_forward.1
= control target key start
LH: loop header
LB: loop body
LE: loop exit
PB: predicated region body
PF: predicated region fallthrough
CT: control target
= control target key end

     0   :  { %12 = vsyncpa [#allocation3], 0  ;;  %s1999_s0 = inlined_call_operand.vmem [shape: bf16[8,32], index: 0, kind: input, shape index: {}]   ;;  %s2000_s1 = inlined_call_operand.hbm [shape: bf16[32,512], index: 1, kind: input, shape index: {}]   ;;  %s2001_s2 = inlined_call_operand.vmem [shape: f32[1,512], index: 2, kind: input, shape index: {}]   ;;  %s2002_s3 = inlined_call_operand.hbm [shape: bf16[512,384], index: 3, kind: input, shape index: {}]   ;;  %s2003_s4 = inlined_call_operand.vmem [shape: f32[1,384], index: 4, kind: input, shape index: {}]   ;;  %s2004_s5 = inlined_call_operand.hbm [shape: bf16[384,128], index: 5, kind: input, shape index: {}]   ;;  %s2005_s6 = inlined_call_operand.vmem [shape: f32[1,128], index: 6, kind: input, shape index: {}]   ;;  %s2006_s7 = inlined_call_operand.hbm [shape: bf16[8,128], index: 7, kind: output, shape index: {}]  }
   0x1   :  { %13 = vsyncpa [#allocation6], 0 }
   0x2   :  { %14 = vsyncpa [#allocation4], 0  ;;  %s1862_s24 = smov [#allocation5]   ;;  %s1768_s28 = scalar_lea.hbm %s2002_s3, 12288 }
   0x3   :  { %s36_s25 = sshll.u32 %s1862_s24, 4  ;;  %p1769_p0 = scmp.ne.s32.totalorder %s2002_s3, %s1768_s28  ;;  %s37_s25 = int_to_ptr.vmem [resolvable:$true] %s36_s25 }
   0x4   :  { %p1772_p1 = scmp.lt.u32.totalorder %s1768_s28, %s2002_s3 }
   0x6   :  { %p1774_p2 = pnand %p1772_p1, %p1769_p0 }
   0x8   :  { %1777 = shalt.err (!%p1774_p2)
}
   0x9   :  { %s1778_s10 = scalar_lea.vmem %s37_s25, 12288  ;;  %p1783_p4 = scmp.lt.s32.totalorder %s37_s25, %s37_s25 }
   0xa   :  { %p1779_p3 = scmp.ne.s32.totalorder %s37_s25, %s1778_s10  ;;  %p1784_p5 = scmp.lt.s32.totalorder %s1778_s10, %s1778_s10 }
   0xc   :  { %p1785_p6 = por %p1784_p5, %p1783_p4 }
   0xe   :  { %p1786_p7 = pnand %p1785_p6, %p1779_p3 }
  0x10   :  { %1789 = shalt.err (!%p1786_p7)
}
  0x11   :  { %s1863_s11 = smov 192   ;;  %s1864_s12 = smov 12  }
  0x12   :  { %42 = dma.hbm_to_vmem [thread:$0]  %s2002_s3, 12288, %s37_s25, [#allocation6], %s1863_s11, %s1863_s11, %s1864_s12  }
  0x13   :  { %s1865_s15 = smov [#allocation2]   ;;  %s1790_s19 = scalar_lea.hbm %s2000_s1, 1024 }
  0x14   :  { %s22_s16 = sshll.u32 %s1865_s15, 4  ;;  %p1791_p8 = scmp.ne.s32.totalorder %s2000_s1, %s1790_s19  ;;  %s23_s16 = int_to_ptr.vmem [resolvable:$true] %s22_s16 }
  0x15   :  { %p1794_p9 = scmp.lt.u32.totalorder %s1790_s19, %s2000_s1 }
  0x17   :  { %p1796_p10 = pnand %p1794_p9, %p1791_p8 }
  0x19   :  { %1799 = shalt.err (!%p1796_p10)
}
  0x1a   :  { %s1800_s24 = scalar_lea.vmem %s23_s16, 1024  ;;  %p1805_p12 = scmp.lt.s32.totalorder %s23_s16, %s23_s16 }
  0x1b   :  { %p1801_p11 = scmp.ne.s32.totalorder %s23_s16, %s1800_s24  ;;  %p1806_p13 = scmp.lt.s32.totalorder %s1800_s24, %s1800_s24 }
  0x1d   :  { %p1807_p0 = por %p1806_p13, %p1805_p12 }
  0x1f   :  { %p1808_p1 = pnand %p1807_p0, %p1801_p11 }
  0x21   :  { %1811 = shalt.err (!%p1808_p1)
}
  0x22   :  { %s1866_s3 = smov 256   ;;  %s1867_s25 = smov 16  }
  0x23   :  { %28 = dma.hbm_to_vmem [thread:$0]  %s2000_s1, 1024, %s23_s16, [#allocation3], %s1866_s3, %s1866_s3, %s1867_s25  }
  0x24   :  { %s1868_s28 = smov [#allocation7]   ;;  %s1812_s9 = scalar_lea.hbm %s2004_s5, 3072 }
  0x25   :  { %s50_s29 = sshll.u32 %s1868_s28, 4  ;;  %p1813_p2 = scmp.ne.s32.totalorder %s2004_s5, %s1812_s9  ;;  %s51_s29 = int_to_ptr.vmem [resolvable:$true] %s50_s29 }
  0x26   :  { %p1816_p3 = scmp.lt.u32.totalorder %s1812_s9, %s2004_s5 }
  0x28   :  { %p1818_p4 = pnand %p1816_p3, %p1813_p2 }
  0x2a   :  { %1821 = shalt.err (!%p1818_p4)
}
  0x2b   :  { %s1822_s14 = scalar_lea.vmem %s51_s29, 3072  ;;  %p1827_p6 = scmp.lt.s32.totalorder %s51_s29, %s51_s29 }
  0x2c   :  { %p1823_p5 = scmp.ne.s32.totalorder %s51_s29, %s1822_s14  ;;  %p1828_p7 = scmp.lt.s32.totalorder %s1822_s14, %s1822_s14 }
  0x2e   :  { %p1829_p8 = por %p1828_p7, %p1827_p6 }
  0x30   :  { %p1830_p9 = pnand %p1829_p8, %p1823_p5 }
  0x32   :  { %1833 = shalt.err (!%p1830_p9)
}
  0x33   :  { %s1869_s1 = smov 64   ;;  %s1870_s15 = smov 4  }
  0x34   :  { %56 = dma.hbm_to_vmem [thread:$0]  %s2004_s5, 3072, %s51_s29, [#allocation6], %s1869_s1, %s1869_s1, %s1870_s15  }
  0x35   :  { %1856 = dma.done.wait [#allocation3], 1024  }
  0x36   :  { %1857 = vsyncadd [#allocation3], 4294966272 }
  0x37   :  { %1858 = dma.done.wait [#allocation6], 15360  }
  0x38   :  { %1859 = vsyncadd [#allocation6], 4294951936  ;;  %v1871_v0 = vmov 0   ;;  %v1602_v1 = vld [vmem:[#allocation2 + $0x4] ss:$16 sps:$4 sm:$0xff]   ;;  %vm140_vm0 = vcmask 261120   ;;  %v80_v60 = vlaneseq }
  0x39   :  { %176 = vmatprep.mubr.bf16.mxu0 %v1871_v0  ;;  %217 = vmatprep.mubr.bf16.mxu1 %v1871_v0  ;;  %v1604_v2 = vld [vmem:[#allocation2] ss:$16 sps:$4 sm:$0xff]   ;;  %v1605_v3 = vld [vmem:[#allocation2 + $0x24] ss:$16 sps:$4 sm:$0xff]   ;;  %v1608_v5 = vld [vmem:[#allocation2 + $0xc] ss:$16 sps:$4 sm:$0xff]  }
  0x3a   :  { %144 = vmatprep.subr.bf16.mxu0 %v1602_v1  ;;  %v1607_v4 = vld [vmem:[#allocation2 + $0x20] ss:$16 sps:$4 sm:$0xff]   ;;  %v1610_v6 = vld [vmem:[#allocation2 + $0x8] ss:$16 sps:$4 sm:$0xff]   ;;  %185 = vmatprep.subr.bf16.mxu1 %v1608_v5  ;;  %v1611_v8 = vld [vmem:[#allocation2 + $0x2c] ss:$16 sps:$4 sm:$0xff]  }
  0x3b   :  { %145 = vmatpush1.bf16.msra.mxu0 %v1604_v2  ;;  %v69_v7 = vld [vmem:[%s1999_s0] sm:$0xf]  ;;  %186 = vmatpush1.bf16.msra.mxu1 %v1610_v6  ;;  %v1616_v10 = vld [vmem:[#allocation5 + $0x4] ss:$12 sps:$4 sm:$0xff]   ;;  %v1614_v11 = vld [vmem:[#allocation5] ss:$12 sps:$4 sm:$0xff]  }
  0x3c   :  { %146 = vmatprep.subr.bf16.mxu0 %v1605_v3  ;;  %v1613_v9 = vld [vmem:[#allocation2 + $0x28] ss:$16 sps:$4 sm:$0xff]   ;;  %187 = vmatprep.subr.bf16.mxu1 %v1611_v8  ;;  %v1622_v14 = vld [vmem:[#allocation5 + $0x34] ss:$12 sps:$4 sm:$0xff]   ;;  %v1620_v15 = vld [vmem:[#allocation5 + $0x30] ss:$12 sps:$4 sm:$0xff]  }
  0x3d   :  { %v1619_v12 = vld [vmem:[#allocation5 + $0x1c] ss:$12 sps:$4 sm:$0xff]   ;;  %v1617_v13 = vld [vmem:[#allocation5 + $0x18] ss:$12 sps:$4 sm:$0xff]   ;;  %v1646_v21 = vld [vmem:[#allocation5 + $0xe0] ss:$12 sps:$4 sm:$0xff]  }
  0x3e   :  { %v1625_v16 = vld [vmem:[#allocation5 + $0x4c] ss:$12 sps:$4 sm:$0xff]   ;;  %v1623_v17 = vld [vmem:[#allocation5 + $0x48] ss:$12 sps:$4 sm:$0xff]   ;;  %v1628_v20 = vld [vmem:[#allocation5 + $0x64] ss:$12 sps:$4 sm:$0xff]  }
  0x3f   :  { %147 = vmatpush1.bf16.msra.mxu0 %v1607_v4  ;;  %188 = vmatpush1.bf16.msra.mxu1 %v1613_v9  ;;  %v1641_v18 = vld [vmem:[#allocation5 + $0xc8] ss:$12 sps:$4 sm:$0xff]   ;;  %v1647_v22 = vld [vmem:[#allocation5 + $0x20] ss:$12 sps:$4 sm:$0xff]   ;;  %v1651_v25 = vld [vmem:[#allocation5 + $0xf8] ss:$12 sps:$4 sm:$0xff]  }
  0x40   :  { %891 = vmatprep.subr.bf16.mxu0 %v1616_v10  ;;  %v1642_v19 = vld [vmem:[#allocation5 + $0x8] ss:$12 sps:$4 sm:$0xff]   ;;  %1488 = vmatprep.subr.bf16.mxu1 %v1641_v18  ;;  %v1626_v23 = vld [vmem:[#allocation5 + $0x60] ss:$12 sps:$4 sm:$0xff]   ;;  %v1652_v26 = vld [vmem:[#allocation5 + $0x38] ss:$12 sps:$4 sm:$0xff]  }
  0x41   :  { %v1631_v24 = vld [vmem:[#allocation5 + $0x7c] ss:$12 sps:$4 sm:$0xff]   ;;  %v1629_v27 = vld [vmem:[#allocation5 + $0x78] ss:$12 sps:$4 sm:$0xff]   ;;  %v1634_v28 = vld [vmem:[#allocation5 + $0x94] ss:$12 sps:$4 sm:$0xff]  }
  0x42   :  { %1365 = vmatmul.mubr.msk.bf16.vlgmr.msra.gmra.mrb[0].mxu0 %vm140_vm0, %v69_v7  ;;  %1366 = vmatmul.mubr.msk.bf16.vlgmr.msra.gmra.mrb[0].mxu1 %vm140_vm0, %v69_v7  ;;  %v1656_v29 = vld [vmem:[#allocation5 + $0x110] ss:$12 sps:$4 sm:$0xff]   ;;  %v1661_v32 = vld [vmem:[#allocation5 + $0x128] ss:$12 sps:$4 sm:$0xff]   ;;  %v1637_v33 = vld [vmem:[#allocation5 + $0xac] ss:$12 sps:$4 sm:$0xff]  }
  0x43   :  { %892 = vmatpush1.bf16.msra.mxu0 %v1614_v11  ;;  %1489 = vmatpush3.bf16.msra.mxu1 %v1642_v19  ;;  %v1657_v30 = vld [vmem:[#allocation5 + $0x50] ss:$12 sps:$4 sm:$0xff]   ;;  %v1662_v34 = vld [vmem:[#allocation5 + $0x68] ss:$12 sps:$4 sm:$0xff]   ;;  %v1666_v36 = vld [vmem:[#allocation5 + $0x140] ss:$12 sps:$4 sm:$0xff]  }
  0x44   :  { %893 = vmatprep.subr.bf16.mxu0 %v1619_v12  ;;  %1490 = vmatprep.subr.bf16.mxu1 %v1646_v21  ;;  %v1632_v31 = vld [vmem:[#allocation5 + $0x90] ss:$12 sps:$4 sm:$0xff]   ;;  %v1635_v35 = vld [vmem:[#allocation5 + $0xa8] ss:$12 sps:$4 sm:$0xff]   ;;  %v1667_v38 = vld [vmem:[#allocation5 + $0x80] ss:$12 sps:$4 sm:$0xff]  }
  0x45   :  { %v1640_v37 = vld [vmem:[#allocation5 + $0xc4] ss:$12 sps:$4 sm:$0xff]   ;;  %v1638_v39 = vld [vmem:[#allocation5 + $0xc0] ss:$12 sps:$4 sm:$0xff]   ;;  %v1645_v40 = vld [vmem:[#allocation5 + $0xdc] ss:$12 sps:$4 sm:$0xff]  }
  0x46   :  { %v1643_v41 = vld [vmem:[#allocation5 + $0xd8] ss:$12 sps:$4 sm:$0xff]   ;;  %v1650_v42 = vld [vmem:[#allocation5 + $0xf4] ss:$12 sps:$4 sm:$0xff]   ;;  %v1648_v43 = vld [vmem:[#allocation5 + $0xf0] ss:$12 sps:$4 sm:$0xff]  }
  0x47   :  { %894 = vmatpush1.bf16.msra.mxu0 %v1617_v13  ;;  %1491 = vmatpush3.bf16.msra.mxu1 %v1647_v22  ;;  %v1655_v44 = vld [vmem:[#allocation5 + $0x10c] ss:$12 sps:$4 sm:$0xff]   ;;  %v1653_v45 = vld [vmem:[#allocation5 + $0x108] ss:$12 sps:$4 sm:$0xff]   ;;  %v1660_v46 = vld [vmem:[#allocation5 + $0x124] ss:$12 sps:$4 sm:$0xff]  }
  0x48   :  { %895 = vmatprep.subr.bf16.mxu0 %v1622_v14  ;;  %1492 = vmatprep.subr.bf16.mxu1 %v1651_v25  ;;  %v1658_v47 = vld [vmem:[#allocation5 + $0x120] ss:$12 sps:$4 sm:$0xff]   ;;  %v1665_v48 = vld [vmem:[#allocation5 + $0x13c] ss:$12 sps:$4 sm:$0xff]   ;;  %v1663_v49 = vld [vmem:[#allocation5 + $0x138] ss:$12 sps:$4 sm:$0xff]  }
  0x49   :  { %v1670_v50 = vld [vmem:[#allocation5 + $0x154] ss:$12 sps:$4 sm:$0xff]   ;;  %v1671_v51 = vld [vmem:[#allocation5 + $0x158] ss:$12 sps:$4 sm:$0xff]   ;;  %v1668_v52 = vld [vmem:[#allocation5 + $0x150] ss:$12 sps:$4 sm:$0xff]  }
  0x4a   :  { %v1672_v53 = vld [vmem:[#allocation5 + $0x98] ss:$12 sps:$4 sm:$0xff]   ;;  %v1676_v55 = vld [vmem:[#allocation5 + $0x170] ss:$12 sps:$4 sm:$0xff]   ;;  %v1673_v56 = vld [vmem:[#allocation5 + $0x168] ss:$12 sps:$4 sm:$0xff]  }
  0x4b   :  { %896 = vmatpush1.bf16.msra.mxu0 %v1620_v15  ;;  %1493 = vmatpush3.bf16.msra.mxu1 %v1652_v26  ;;  %v1675_v54 = vld [vmem:[#allocation5 + $0x16c] ss:$12 sps:$4 sm:$0xff]   ;;  %v1677_v57 = vld [vmem:[#allocation5 + $0xb0] ss:$12 sps:$4 sm:$0xff]   ;;  %v1681_v59 = vld [vmem:[#allocation5 + $0x248] ss:$12 sps:$4 sm:$0xff]  }
  0x4c   :  { %897 = vmatprep.subr.bf16.mxu0 %v1625_v16  ;;  %1494 = vmatprep.subr.bf16.mxu1 %v1656_v29  ;;  %v1680_v58 = vld [vmem:[#allocation5 + $0x184] ss:$12 sps:$4 sm:$0xff]   ;;  %v1954_v61 = vshrl.u32 %v80_v60, 7  ;;  %v1960_v63 = vld [vmem:[%s2001_s2] sm:$0xf]  ;;  %vm1873_vm1 = vmmov 0  }
  0x4d   :  { %v1678_v18 = vld [vmem:[#allocation5 + $0x180] ss:$12 sps:$4 sm:$0xff]   ;;  %v1682_v19 = vld [vmem:[#allocation5 + $0x188] ss:$12 sps:$4 sm:$0xff]   ;;  %v1683_v26 = vld [vmem:[#allocation5 + $0x198] ss:$12 sps:$4 sm:$0xff]  }
  0x4e   :  { %v82_v62 = vsub.s32 0, %v1954_v61  ;;  %v86_v0 = vsub.s32 1, %v1954_v61  ;;  %v94_v2 = vsub.s32 3, %v1954_v61  ;;  %v1685_v22 = vld [vmem:[#allocation5 + $0x19c] ss:$12 sps:$4 sm:$0xff]   ;;  %s1874_s22 = smov [#allocation8]  }
  0x4f   :  { %898 = vmatpush1.bf16.msra.mxu0 %v1623_v17  ;;  %1495 = vmatpush3.bf16.msra.mxu1 %v1657_v30  ;;  %v1691_v29 = vld [vmem:[#allocation5 + $0x278] ss:$12 sps:$4 sm:$0xff]   ;;  %v1688_v30 = vld [vmem:[#allocation5 + $0x1b0] ss:$12 sps:$4 sm:$0xff]   ;;  %s1347_s23 = sshll.u32 %s1874_s22, 4  ;;  %s1348_s23 = int_to_ptr.vmem [resolvable:$true] %s1347_s23 }
  0x50   :  { %899 = vmatprep.subr.bf16.mxu0 %v1628_v20  ;;  %1496 = vmatprep.subr.bf16.mxu1 %v1661_v32  ;;  %v83_v1 = vrot.slane %v1960_v63, %v82_v62  ;;  %v87_v3 = vrot.slane %v1960_v63, %v86_v0  ;;  %v95_v7 = vrot.slane %v1960_v63, %v94_v2  ;;  %v1695_v32 = vld [vmem:[#allocation5 + $0x1cc] ss:$12 sps:$4 sm:$0xff]   ;;  %s1834_s24 = scalar_lea.vmem %s1348_s23, 64  ;;  %p1839_p11 = scmp.lt.s32.totalorder %s1348_s23, %s1348_s23 }
  0x51   :  { %v1721_v60 = vld [vmem:[#allocation5 + $0x258] ss:$12 sps:$4 sm:$0xff]   ;;  %p1835_p10 = scmp.ne.s32.totalorder %s1348_s23, %s1834_s24  ;;  %p1840_p12 = scmp.lt.s32.totalorder %s1834_s24, %s1834_s24 }
  0x52   :  { %v1729_v2 = vld [vmem:[#allocation5 + $0x28c] ss:$12 sps:$4 sm:$0xff]  }
  0x53   :  { %900 = vmatpush1.bf16.msra.mxu0 %v1626_v23  ;;  %1497 = vmatpush3.bf16.msra.mxu1 %v1662_v34  ;;  %v1686_v23 = vld [vmem:[#allocation5 + $0x260] ss:$12 sps:$4 sm:$0xff]   ;;  %v1693_v34 = vld [vmem:[#allocation5 + $0x1c8] ss:$12 sps:$4 sm:$0xff]   ;;  %p1841_p13 = por %p1840_p12, %p1839_p11 }
  0x54   :  { %901 = vmatprep.subr.bf16.mxu0 %v1631_v24  ;;  %1498 = vmatprep.subr.bf16.mxu1 %v1666_v36  ;;  %v1700_v36 = vld [vmem:[#allocation5 + $0x1e4] ss:$12 sps:$4 sm:$0xff]  }
  0x55   :  { %p1842_p0 = pnand %p1841_p13, %p1835_p10 }
  0x57   :  { %902 = vmatpush1.bf16.msra.mxu0 %v1629_v27  ;;  %1499 = vmatpush3.bf16.msra.mxu1 %v1667_v38  ;;  %v1687_v27 = vld [vmem:[#allocation5 + $0x1a0] ss:$12 sps:$4 sm:$0xff]   ;;  %v90_v38 = vsub.s32 2, %v1954_v61  ;;  %v1760_v61 = vld [vmem:[#allocation7 + $0x90] sm:$0xff]  }
  0x58   :  { %903 = vmatprep.subr.bf16.mxu0 %v1634_v28  ;;  %1500 = vmatprep.subr.bf16.mxu1 %v1671_v51  ;;  %v1690_v28 = vld [vmem:[#allocation5 + $0x1b4] ss:$12 sps:$4 sm:$0xff]   ;;  %v1715_v51 = vld [vmem:[#allocation5 + $0x22c] ss:$12 sps:$4 sm:$0xff]  }
  0x5b   :  { %904 = vmatpush1.bf16.msra.mxu0 %v1632_v31  ;;  %1501 = vmatpush3.bf16.msra.mxu1 %v1672_v53  ;;  %v1692_v31 = vld [vmem:[#allocation5 + $0x1b8] ss:$12 sps:$4 sm:$0xff]  }
  0x5c   :  { %905 = vmatprep.subr.bf16.mxu0 %v1637_v33  ;;  %1502 = vmatprep.subr.bf16.mxu1 %v1676_v55  ;;  %v1696_v33 = vld [vmem:[#allocation5 + $0x290] ss:$12 sps:$4 sm:$0xff]  }
  0x5d   :  { %v1717_v55 = vld [vmem:[#allocation5 + $0x230] ss:$12 sps:$4 sm:$0xff]  }
  0x5f   :  { %906 = vmatpush1.bf16.msra.mxu0 %v1635_v35  ;;  %1503 = vmatpush3.bf16.msra.mxu1 %v1677_v57  ;;  %v1697_v35 = vld [vmem:[#allocation5 + $0x1d0] ss:$12 sps:$4 sm:$0xff]  }
  0x60   :  { %907 = vmatprep.subr.bf16.mxu0 %v1640_v37  ;;  %1510 = vmatprep.subr.bf16.mxu1 %v1681_v59  ;;  %v1701_v37 = vld [vmem:[#allocation5 + $0x2a8] ss:$12 sps:$4 sm:$0xff]  }
  0x61   :  { %v1723_v59 = vld [vmem:[#allocation5 + $0x25c] ss:$12 sps:$4 sm:$0xff]  }
  0x63   :  { %908 = vmatpush1.bf16.msra.mxu0 %v1638_v39  ;;  %v1698_v39 = vld [vmem:[#allocation5 + $0x1e0] ss:$12 sps:$4 sm:$0xff]  }
  0x64   :  { %909 = vmatprep.subr.bf16.mxu0 %v1645_v40  ;;  %v1702_v40 = vld [vmem:[#allocation5 + $0x1e8] ss:$12 sps:$4 sm:$0xff]  }
  0x67   :  { %910 = vmatpush1.bf16.msra.mxu0 %v1643_v41  ;;  %v1705_v41 = vld [vmem:[#allocation5 + $0x1fc] ss:$12 sps:$4 sm:$0xff]  }
  0x68   :  { %911 = vmatprep.subr.bf16.mxu0 %v1650_v42  ;;  %v1706_v42 = vld [vmem:[#allocation5 + $0x2c0] ss:$12 sps:$4 sm:$0xff]  }
  0x6b   :  { %912 = vmatpush1.bf16.msra.mxu0 %v1648_v43  ;;  %v91_v43 = vrot.slane %v1960_v63, %v90_v38  ;;  %v1726_v63 = vld [vmem:[#allocation5 + $0x274] ss:$12 sps:$4 sm:$0xff]  }
  0x6c   :  { %913 = vmatprep.subr.bf16.mxu0 %v1655_v44  ;;  %v1703_v44 = vld [vmem:[#allocation5 + $0x1f8] ss:$12 sps:$4 sm:$0xff]  }
  0x6f   :  { %914 = vmatpush1.bf16.msra.mxu0 %v1653_v45  ;;  %v1707_v45 = vld [vmem:[#allocation5 + $0x200] ss:$12 sps:$4 sm:$0xff]  }
  0x70   :  { %915 = vmatprep.subr.bf16.mxu0 %v1660_v46  ;;  %v1710_v46 = vld [vmem:[#allocation5 + $0x214] ss:$12 sps:$4 sm:$0xff]  }
  0x73   :  { %916 = vmatpush1.bf16.msra.mxu0 %v1658_v47  ;;  %v1711_v47 = vld [vmem:[#allocation5 + $0x2d8] ss:$12 sps:$4 sm:$0xff]  }
  0x74   :  { %917 = vmatprep.subr.bf16.mxu0 %v1665_v48 }
  0x77   :  { %918 = vmatpush1.bf16.msra.mxu0 %v1663_v49  ;;  %v1708_v49 = vld [vmem:[#allocation5 + $0x210] ss:$12 sps:$4 sm:$0xff]  }
  0x78   :  { %919 = vmatprep.subr.bf16.mxu0 %v1670_v50  ;;  %v1712_v50 = vld [vmem:[#allocation5 + $0x218] ss:$12 sps:$4 sm:$0xff]  }
  0x7b   :  { %920 = vmatpush1.bf16.msra.mxu0 %v1668_v52  ;;  %v1716_v52 = vld [vmem:[#allocation5 + $0x2f0] ss:$12 sps:$4 sm:$0xff]  }
  0x7c   :  { %921 = vmatprep.subr.bf16.mxu0 %v1675_v54  ;;  %v1713_v54 = vld [vmem:[#allocation5 + $0x228] ss:$12 sps:$4 sm:$0xff]  }
  0x7f   :  { %922 = vmatpush1.bf16.msra.mxu0 %v1673_v56  ;;  %v1720_v56 = vld [vmem:[#allocation5 + $0x244] ss:$12 sps:$4 sm:$0xff]  }
  0x80   :  { %932 = vmatprep.subr.bf16.mxu0 %v1680_v58  ;;  %v1718_v58 = vld [vmem:[#allocation5 + $0x240] ss:$12 sps:$4 sm:$0xff]  }
 0x115   :  { %v178_v4 = vpop.f32.mrb[0].mxu0  ;;  %v219_v12 = vpop.f32.mrb[0].mxu1 }
 0x116   :  { %v179_v5 = vadd.f32 %v178_v4, %v83_v1  ;;  %v180_v6 = vpop.f32.mrb[1].mxu0  ;;  %v221_v14 = vpop.f32.mrb[1].mxu1  ;;  %v220_v48 = vadd.f32 %v219_v12, %v91_v43  ;;  %v1724_v1 = vld [vmem:[#allocation5 + $0x270] ss:$12 sps:$4 sm:$0xff]   ;;  %v1742_v12 = vld [vmem:[#allocation7 + $0x40] sm:$0xff]  }
 0x117   :  { %v181_v8 = vadd.f32 %v180_v6, %v87_v3  ;;  %v182_v9 = vpop.f32.mrb[2].mxu0  ;;  %v222_v15 = vadd.f32 %v221_v14, %v95_v7  ;;  %v223_v16 = vpop.f32.mrb[2].mxu1  ;;  %v1727_v3 = vld [vmem:[#allocation5 + $0x288] ss:$12 sps:$4 sm:$0xff]   ;;  %v1732_v4 = vld [vmem:[#allocation5 + $0x2a4] ss:$12 sps:$4 sm:$0xff]  }
 0x118   :  { %v226_v10 = vmax.f32 %v179_v5, 0.0  ;;  %v183_v11 = vpop.f32.mrb[3].mxu0  ;;  %v224_v20 = vpop.f32.mrb[3].mxu1  ;;  %v228_v53 = vmax.f32 %v220_v48, 0.0  ;;  %v1730_v5 = vld [vmem:[#allocation5 + $0x2a0] ss:$12 sps:$4 sm:$0xff]  }
 0x119   :  { %v227_v13 = vmax.f32 %v181_v8, 0.0  ;;  %v229_v24 = vmax.f32 %v222_v15, 0.0  ;;  %v1735_v6 = vld [vmem:[#allocation5 + $0x2bc] ss:$12 sps:$4 sm:$0xff]   ;;  %v1733_v7 = vld [vmem:[#allocation5 + $0x2b8] ss:$12 sps:$4 sm:$0xff]  }
 0x11a   :  { %v230_v21 = vpack.c.bf16 %v226_v10, %v226_v10  ;;  %v232_v57 = vpack.c.bf16 %v228_v53, %v228_v53  ;;  %v1738_v8 = vld [vmem:[#allocation5 + $0x2d4] ss:$12 sps:$4 sm:$0xff]   ;;  %v1736_v9 = vld [vmem:[#allocation5 + $0x2d0] ss:$12 sps:$4 sm:$0xff]   ;;  %v1741_v10 = vld [vmem:[#allocation5 + $0x2ec] ss:$12 sps:$4 sm:$0xff]  }
 0x11b   :  { %v231_v17 = vpack.c.bf16 %v227_v13, %v227_v13  ;;  %v233_v25 = vpack.c.bf16 %v229_v24, %v229_v24  ;;  %v1739_v11 = vld [vmem:[#allocation5 + $0x2e8] ss:$12 sps:$4 sm:$0xff]   ;;  %v1743_v13 = vld [vmem:[#allocation7] sm:$0xff]  }
 0x11c   :  { %v1744_v14 = vld [vmem:[#allocation7 + $0x48] sm:$0xff]   ;;  %v1746_v16 = vld [vmem:[#allocation7 + $0x50] sm:$0xff]   ;;  %v1750_v20 = vld [vmem:[#allocation7 + $0x60] sm:$0xff]  }
 0x11d   :  { %923 = vmatprep.mubr.bf16.mxu0 %v231_v17  ;;  %1005 = vmatprep.mubr.bf16.mxu1 %v231_v17  ;;  %v1745_v15 = vld [vmem:[#allocation7 + $0x8] sm:$0xff]   ;;  %v1747_v17 = vld [vmem:[#allocation7 + $0x10] sm:$0xff]  }
 0x11e   :  { %924 = vmatmul.mubr.bf16.vlgmr.msra.gmra.mrb[4].mxu0 %v230_v21  ;;  %1006 = vmatmul.mubr.bf16.vlgmr.msra.gmra.mrb[4].mxu1 %v230_v21  ;;  %v1751_v21 = vld [vmem:[#allocation7 + $0x20] sm:$0xff]   ;;  %v1754_v24 = vld [vmem:[#allocation7 + $0x70] sm:$0xff]  }
 0x11f   :  { %933 = vmatpush1.bf16.msra.mxu0 %v1678_v18  ;;  %1511 = vmatpush3.bf16.msra.mxu1 %v1682_v19  ;;  %v1748_v18 = vld [vmem:[#allocation7 + $0x58] sm:$0xff]  }
 0x120   :  { %934 = vmatprep.subr.bf16.mxu0 %v1685_v22  ;;  %1512 = vmatprep.subr.bf16.mxu1 %v1686_v23  ;;  %v1749_v19 = vld [vmem:[#allocation7 + $0x18] sm:$0xff]   ;;  %v1752_v22 = vld [vmem:[#allocation7 + $0x68] sm:$0xff]  }
 0x121   :  { %1045 = vmatprep.mubr.bf16.mxu1 %v233_v25  ;;  %964 = vmatprep.mubr.bf16.mxu0 %v233_v25  ;;  %v1753_v23 = vld [vmem:[#allocation7 + $0x28] sm:$0xff]   ;;  %v1755_v25 = vld [vmem:[#allocation7 + $0x30] sm:$0xff]  }
 0x123   :  { %935 = vmatpush1.bf16.msra.mxu0 %v1683_v26  ;;  %1513 = vmatpush3.bf16.msra.mxu1 %v1687_v27  ;;  %v1756_v26 = vld [vmem:[#allocation7 + $0x78] sm:$0xff]  }
 0x124   :  { %936 = vmatprep.subr.bf16.mxu0 %v1690_v28  ;;  %1514 = vmatprep.subr.bf16.mxu1 %v1691_v29  ;;  %v1757_v27 = vld [vmem:[#allocation7 + $0x38] sm:$0xff]   ;;  %v1872_v28 = vmov 0.0  }
 0x127   :  { %937 = vmatpush1.bf16.msra.mxu0 %v1688_v30  ;;  %1515 = vmatpush3.bf16.msra.mxu1 %v1692_v31 }
 0x128   :  { %938 = vmatprep.subr.bf16.mxu0 %v1695_v32  ;;  %1516 = vmatprep.subr.bf16.mxu1 %v1696_v33 }
 0x12b   :  { %939 = vmatpush1.bf16.msra.mxu0 %v1693_v34  ;;  %1517 = vmatpush3.bf16.msra.mxu1 %v1697_v35  ;;  %v362_v34 = vld [vmem:[%s2003_s4] sm:$0x7] }
 0x12c   :  { %940 = vmatprep.subr.bf16.mxu0 %v1700_v36  ;;  %1518 = vmatprep.subr.bf16.mxu1 %v1701_v37  ;;  %v375_v35 = vrot.slane %v362_v34, %v90_v38 }
 0x12f   :  { %941 = vmatpush1.bf16.msra.mxu0 %v1698_v39  ;;  %1519 = vmatpush3.bf16.msra.mxu1 %v1702_v40 }
 0x130   :  { %942 = vmatprep.subr.bf16.mxu0 %v1705_v41  ;;  %1520 = vmatprep.subr.bf16.mxu1 %v1706_v42 }
 0x133   :  { %943 = vmatpush1.bf16.msra.mxu0 %v1703_v44  ;;  %1521 = vmatpush3.bf16.msra.mxu1 %v1707_v45  ;;  %v367_v44 = vrot.slane %v362_v34, %v82_v62  ;;  %v371_v45 = vrot.slane %v362_v34, %v86_v0  ;;  %v1761_v62 = vld [vmem:[#allocation7 + $0x98] sm:$0xff]   ;;  %v1762_v0 = vld [vmem:[#allocation7 + $0xa0] sm:$0xff]  }
 0x134   :  { %944 = vmatprep.subr.bf16.mxu0 %v1710_v46  ;;  %1522 = vmatprep.subr.bf16.mxu1 %v1711_v47 }
 0x137   :  { %945 = vmatpush1.bf16.msra.mxu0 %v1708_v49  ;;  %1523 = vmatpush3.bf16.msra.mxu1 %v1712_v50 }
 0x138   :  { %946 = vmatprep.subr.bf16.mxu0 %v1715_v51  ;;  %1524 = vmatprep.subr.bf16.mxu1 %v1716_v52 }
 0x13b   :  { %947 = vmatpush1.bf16.msra.mxu0 %v1713_v54  ;;  %1525 = vmatpush3.bf16.msra.mxu1 %v1717_v55  ;;  %v1758_v54 = vld [vmem:[#allocation7 + $0x80] sm:$0xff]  }
 0x13c   :  { %948 = vmatprep.subr.bf16.mxu0 %v1720_v56  ;;  %1532 = vmatprep.subr.bf16.mxu1 %v1742_v12  ;;  %v1759_v56 = vld [vmem:[#allocation7 + $0x88] sm:$0xff]  }
 0x13e   :  { %1046 = vmatmul.mubr.bf16.vlgmr.msra.gmra.mrb[8].mxu1 %v232_v57 }
 0x13f   :  { %949 = vmatpush1.bf16.msra.mxu0 %v1718_v58  ;;  %1533 = vmatpush3.bf16.msra.mxu1 %v1743_v13  ;;  %v1764_v58 = vld [vmem:[#allocation7 + $0xb0] sm:$0xff]  }
 0x140   :  { %950 = vmatprep.subr.bf16.mxu0 %v1723_v59  ;;  %1534 = vmatprep.subr.bf16.mxu1 %v1744_v14  ;;  %v1765_v59 = vld [vmem:[#allocation7 + $0xb8] sm:$0xff]  }
 0x143   :  { %951 = vmatpush1.bf16.msra.mxu0 %v1721_v60  ;;  %1535 = vmatpush3.bf16.msra.mxu1 %v1745_v15 }
 0x144   :  { %952 = vmatprep.subr.bf16.mxu0 %v1726_v63  ;;  %1536 = vmatprep.subr.bf16.mxu1 %v1746_v16 }
 0x147   :  { %953 = vmatpush1.bf16.msra.mxu0 %v1724_v1  ;;  %1537 = vmatpush3.bf16.msra.mxu1 %v1747_v17 }
 0x148   :  { %954 = vmatprep.subr.bf16.mxu0 %v1729_v2  ;;  %1538 = vmatprep.subr.bf16.mxu1 %v1748_v18 }
 0x14b   :  { %955 = vmatpush1.bf16.msra.mxu0 %v1727_v3  ;;  %1539 = vmatpush3.bf16.msra.mxu1 %v1749_v19 }
 0x14c   :  { %956 = vmatprep.subr.bf16.mxu0 %v1732_v4  ;;  %1540 = vmatprep.subr.bf16.mxu1 %v1750_v20 }
 0x14f   :  { %957 = vmatpush1.bf16.msra.mxu0 %v1730_v5  ;;  %1541 = vmatpush3.bf16.msra.mxu1 %v1751_v21 }
 0x150   :  { %958 = vmatprep.subr.bf16.mxu0 %v1735_v6  ;;  %1542 = vmatprep.subr.bf16.mxu1 %v1752_v22  ;;  %v1463_v6 = vld [vmem:[%s2005_s6] ss:$0 sm:$0xff] }
 0x153   :  { %959 = vmatpush1.bf16.msra.mxu0 %v1733_v7  ;;  %1543 = vmatpush3.bf16.msra.mxu1 %v1753_v23 }
 0x154   :  { %960 = vmatprep.subr.bf16.mxu0 %v1738_v8  ;;  %1544 = vmatprep.subr.bf16.mxu1 %v1754_v24 }
 0x157   :  { %961 = vmatpush1.bf16.msra.mxu0 %v1736_v9  ;;  %1545 = vmatpush3.bf16.msra.mxu1 %v1755_v25 }
 0x158   :  { %962 = vmatprep.subr.bf16.mxu0 %v1741_v10  ;;  %1546 = vmatprep.subr.bf16.mxu1 %v1756_v26 }
 0x15b   :  { %963 = vmatpush1.bf16.msra.mxu0 %v1739_v11  ;;  %1547 = vmatpush3.bf16.msra.mxu1 %v1757_v27 }
 0x15c   :  { %1563 = vmatprep.subr.bf16.mxu1 %v1872_v28 }
 0x15e   :  { %965 = vmatmul.mubr.bf16.vlgmr.msra.gmra.mrb[4].mxu0 %v232_v57  ;;  %v1763_v57 = vld [vmem:[#allocation7 + $0xa8] sm:$0xff]  }
 0x1f1   :  { %v1504_v29 = vpop.f32.mrb[4].mxu1 }
 0x1f2   :  { %v1505_v30 = vpop.f32.mrb[5].mxu1 }
 0x1f3   :  { %v1506_v31 = vadd.f32 %v1505_v30, %v1504_v29  ;;  %v1507_v32 = vpop.f32.mrb[6].mxu1 }
 0x1f4   :  { %v1508_v33 = vpop.f32.mrb[7].mxu1 }
 0x1f5   :  { %v1008_v39 = vadd.f32 %v1506_v31, %v375_v35 }
 0x211   :  { %v1526_v36 = vpop.f32.mrb[8].mxu1 }
 0x212   :  { %v1527_v37 = vpop.f32.mrb[9].mxu1 }
 0x213   :  { %v1528_v40 = vadd.f32 %v1527_v37, %v1526_v36  ;;  %v1529_v41 = vpop.f32.mrb[10].mxu1 }
 0x214   :  { %v1530_v42 = vpop.f32.mrb[11].mxu1 }
 0x215   :  { %v1048_v43 = vadd.f32 %v1528_v40, %v1008_v39 }
 0x217   :  { %v1055_v60 = vmax.f32 %v1048_v43, 0.0 }
 0x219   :  { %v1058_v63 = vpack.c.bf16 %v1055_v60, %v1055_v60 }
 0x231   :  { %v966_v46 = vpop.f32.mrb[4].mxu0 }
 0x232   :  { %v1583_v47 = vadd.f32 %v966_v46, %v367_v44  ;;  %v968_v48 = vpop.f32.mrb[5].mxu0 }
 0x233   :  { %v1584_v49 = vadd.f32 %v968_v48, %v371_v45  ;;  %v970_v50 = vpop.f32.mrb[6].mxu0 }
 0x234   :  { %v1053_v51 = vmax.f32 %v1583_v47, 0.0  ;;  %v971_v38 = vpop.f32.mrb[7].mxu0 }
 0x235   :  { %v1054_v52 = vmax.f32 %v1584_v49, 0.0 }
 0x236   :  { %v1056_v55 = vpack.c.bf16 %v1053_v51, %v1053_v51 }
 0x237   :  { %v1057_v53 = vpack.c.bf16 %v1054_v52, %v1054_v52 }
 0x239   :  { %1290 = vmatprep.mubr.bf16.mxu1 %v1057_v53 }
 0x23a   :  { %1291 = vmatmul.mubr.bf16.vlgmr.msra.gmra.mrb[12].mxu1 %v1056_v55 }
 0x23b   :  { %1564 = vmatpush3.bf16.msra.mxu1 %v1758_v54  ;;  %1579 = vmatprep.mubr.msk.bf16.mxu1 %vm1873_vm1, %v1872_v28 }
 0x23c   :  { %1565 = vmatprep.subr.bf16.mxu1 %v1872_v28 }
 0x23f   :  { %1566 = vmatpush3.bf16.msra.mxu1 %v1759_v56 }
 0x240   :  { %1567 = vmatprep.subr.bf16.mxu1 %v1872_v28 }
 0x243   :  { %1568 = vmatpush3.bf16.msra.mxu1 %v1760_v61 }
 0x244   :  { %1569 = vmatprep.subr.bf16.mxu1 %v1872_v28 }
 0x247   :  { %1570 = vmatpush3.bf16.msra.mxu1 %v1761_v62 }
 0x248   :  { %1571 = vmatprep.subr.bf16.mxu1 %v1872_v28 }
 0x24b   :  { %1572 = vmatpush3.bf16.msra.mxu1 %v1762_v0 }
 0x24c   :  { %1573 = vmatprep.subr.bf16.mxu1 %v1872_v28 }
 0x24f   :  { %1574 = vmatpush3.bf16.msra.mxu1 %v1763_v57 }
 0x250   :  { %1575 = vmatprep.subr.bf16.mxu1 %v1872_v28 }
 0x253   :  { %1576 = vmatpush3.bf16.msra.mxu1 %v1764_v58 }
 0x254   :  { %1577 = vmatprep.subr.bf16.mxu1 %v1872_v28 }
 0x257   :  { %1578 = vmatpush3.bf16.msra.mxu1 %v1765_v59 }
 0x25a   :  { %1580 = vmatmul.mubr.bf16.vlgmr.msra.gmra.mrb[16].mxu1 %v1058_v63 }
 0x30d   :  { %v1548_v1 = vpop.f32.mrb[12].mxu1 }
 0x30e   :  { %v1549_v2 = vpop.f32.mrb[13].mxu1 }
 0x30f   :  { %v1550_v3 = vadd.f32 %v1549_v2, %v1548_v1  ;;  %v1551_v4 = vpop.f32.mrb[14].mxu1 }
 0x310   :  { %v1552_v5 = vpop.f32.mrb[15].mxu1 }
 0x311   :  { %v1293_v7 = vadd.f32 %v1550_v3, %v1463_v6 }
 0x32d   :  { %v1332_v8 = vpop.f32.mrb[16].mxu1 }
 0x32e   :  { %v1333_v9 = vadd.f32 %v1332_v8, %v1293_v7  ;;  %v1581_v10 = vpop.f32.mrb[17].mxu1 }
 0x32f   :  { %v1335_v11 = vpop.f32.mrb[18].mxu1 }
 0x330   :  { %1766 = vtanh.f32 %v1333_v9  ;;  %v1582_v12 = vpop.f32.mrb[19].mxu1 }
 0x33a   :  { %v1767_v13 = vpop.eup %1766 }
 0x33b   :  { %v1339_v14 = vpack.c.bf16 %v1767_v13, %v1767_v13 }
 0x33d   :  { %1340 = vst [vmem:[#allocation8] sm:$0xf] %v1339_v14 }
 0x33e   :  { %1845 = shalt.err (!%p1842_p0)
}
 0x33f   :  { %s1846_s25 = scalar_lea.hbm %s2006_s7, 64 }
 0x340   :  { %p1847_p1 = scmp.ne.s32.totalorder %s2006_s7, %s1846_s25  ;;  %p1850_p2 = scmp.lt.u32.totalorder %s1846_s25, %s2006_s7 }
 0x342   :  { %p1852_p3 = pnand %p1850_p2, %p1847_p1 }
 0x344   :  { %1855 = shalt.err (!%p1852_p3)
}
 0x345   :  { %1350 = dma.vmem_to_hbm [thread:$0]  %s1348_s23, 64, %s2006_s7, [#allocation4]  }
 0x346   :  { %1860 = dma.done.wait [#allocation4], 64  }
 0x347   :  { %1861 = vsyncadd [#allocation4], 4294967232 }
 0x348   :  { %1354 = vsyncpa [#allocation3], 1 }
 0x349   :  { %1355 = vsyncpa [#allocation6], 1 }
 0x34a   :  { %1356 = vsyncpa [#allocation4], 1 }

</bundles_post_ra>
